<compile_context>
chip_gen: v7x
topology: tpu7x:2x2x1
jax: 0.10.0
libtpu: 0.0.40
codegen_flags: <defaults>
</compile_context>

<pallas_src>
import functools

import jax
import jax.numpy as jnp
from jax.experimental import pallas as pl
from jax.experimental.pallas import tpu as pltpu


# ---------------------------------------------------------------------------
# Kernel
# ---------------------------------------------------------------------------
def _linear_allreduce_kernel(*refs, has_bias, use_scratch):
    """One (tm, tn) output tile; grid axis 2 walks the K reduction."""
    x_ref, w_ref = refs[0], refs[1]
    b_ref = refs[2] if has_bias else None
    o_ref = refs[2 + int(has_bias)]
    acc_ref = refs[3 + int(has_bias)] if use_scratch else None
    acc = acc_ref if use_scratch else o_ref  # f32 output: accumulate in place

    k = pl.program_id(2)

    @pl.when(k == 0)
    def _():
        acc[...] = jnp.zeros_like(acc)

    # x tile (tm, tk) @ weightT tile (tk, tn) on the MXU, f32 accumulation.
    # Weight was pre-transposed to [K, N] once in the wrapper, so this is the
    # canonical contraction -- no per-step transpose anywhere.
    acc[...] += jnp.dot(
        x_ref[...], w_ref[...], preferred_element_type=jnp.float32
    )

    @pl.when(k == pl.num_programs(2) - 1)
    def _():
        if use_scratch:
            out = acc_ref[...]
            if has_bias:
                out = out + b_ref[...].astype(jnp.float32)  # (1, tn) broadcasts
            o_ref[...] = out.astype(o_ref.dtype)
        elif has_bias:
            o_ref[...] = o_ref[...] + b_ref[...].astype(o_ref.dtype)


# ---------------------------------------------------------------------------
# Helpers
# ---------------------------------------------------------------------------
def _round_up(a, b):
    return pl.cdiv(a, b) * b


def _pad_to(a, target_shape):
    pads = [(0, t - s) for s, t in zip(a.shape, target_shape)]
    if any(p[1] for p in pads):
        return jnp.pad(a, pads)
    return a


def _tile_prefs():
    """Generation-aware (tm, tn, tk, vmem_cap_bytes) preferences."""
    kind = ""
    try:
        kind = jax.devices()[0].device_kind.lower()
    except Exception:
        pass
    if "v7" in kind:
        # 64 MiB physical VMEM but ~3.2 TB/s HBM: smaller tiles reach roofline.
        return 768, 768, 512, 48 << 20
    if "v6" in kind:
        # 918 TF/s vs ~1.4 TB/s: needs big output tiles; 128 MiB physical VMEM.
        return 1024, 1024, 512, 100 << 20
    if "v5" in kind:
        # 197 TF/s vs ~0.82 TB/s: 512x512 is already compute-bound.
        return 512, 512, 1024, 64 << 20
    # Unknown backend: conservative, still lane-dense.
    return 512, 512, 512, 48 << 20


# ---------------------------------------------------------------------------
# Module wrapper (weight prepared once, like the nn.Module holding Parameters)
# ---------------------------------------------------------------------------
class LinearAllreduce:
    """Pallas TPU equivalent of DeepSpeed LinearAllreduce.forward."""

    def __init__(self, weight, bias=None, mp_group=None):
        weight = jnp.asarray(weight)
        self.N, self.K = weight.shape
        self.mp_group = mp_group  # TODO(synk): all_reduce not implemented (single device).

        tm_pref, tn_pref, tk_pref, vmem_cap = _tile_prefs()
        self._tm_pref = tm_pref
        self._vmem_cap = vmem_cap

        # Lane-dense output width: round N up to a multiple of 128.
        self.tn = min(tn_pref, int(_round_up(self.N, 128)))
        self.Np = int(_round_up(self.N, self.tn))

        # K tiling: full extent when small (no padding), else 128-aligned tiles.
        if self.K <= tk_pref:
            self.tk = self.K
            self.Kp = self.K
        else:
            self.tk = tk_pref
            self.Kp = int(_round_up(self.K, self.tk))

        # Prepare the static weight ONCE: transpose [N,K] -> [K,N], then pad.
        self.wT = _pad_to(weight.T, (self.Kp, self.Np))

        self.has_bias = bias is not None
        if self.has_bias:
            self.bias2d = _pad_to(jnp.asarray(bias).reshape(1, self.N),
                                  (1, self.Np))
        else:
            self.bias2d = None

    def __call__(self, x):
        *lead, K = x.shape
        assert K == self.K, f"feature mismatch: {K} vs {self.K}"
        M = 1
        for d in lead:
            M *= d
        x2d = x.reshape(M, K)

        tm = M if M <= self._tm_pref else self._tm_pref
        Mp = int(_round_up(M, tm))
        # Only pad the activation when strictly required (ragged M tail or
        # padded K); at typical serving/training shapes this is a no-op.
        x2d = _pad_to(x2d, (Mp, self.Kp))

        tn, tk, Np, Kp = self.tn, self.tk, self.Np, self.Kp
        out_dtype = x.dtype
        use_scratch = jnp.dtype(out_dtype) != jnp.dtype(jnp.float32)

        in_specs = [
            pl.BlockSpec((tm, tk), lambda i, j, k: (i, k)),  # x [Mp, Kp]
            pl.BlockSpec((tk, tn), lambda i, j, k: (k, j)),  # weightT [Kp, Np]
        ]
        inputs = [x2d, self.wT]
        if self.has_bias:
            in_specs.append(pl.BlockSpec((1, tn), lambda i, j, k: (0, j)))
            inputs.append(self.bias2d)

        scratch_shapes = (
            [pltpu.VMEM((tm, tn), jnp.float32)] if use_scratch else []
        )

        # VMEM footprint of the pipelined buffers (2x inputs, 2x outputs,
        # + f32 accumulator), with headroom, capped per generation.
        xb = x2d.dtype.itemsize
        wb = self.wT.dtype.itemsize
        ob = jnp.dtype(out_dtype).itemsize
        est = (
            2 * (tm * tk * xb + tk * tn * wb)
            + (tm * tn * 4 if use_scratch else 0)
            + 2 * tm * tn * ob
            + (2 * tn * self.bias2d.dtype.itemsize if self.has_bias else 0)
        )
        vmem_limit = int(
            min(max(int(1.5 * est) + (2 << 20), 32 << 20), self._vmem_cap)
        )

        gi, gj, gk = Mp // tm, Np // tn, Kp // tk
        cost = pl.CostEstimate(
            flops=2 * Mp * Np * Kp,
            transcendentals=0,
            # Actual streamed traffic for this tiling: x re-read gj times,
            # weight re-read gi times, output written once (+bias per i-row).
            bytes_accessed=(
                Mp * Kp * xb * gj
                + Kp * Np * wb * gi
                + Mp * Np * ob
                + (Np * self.bias2d.dtype.itemsize * gi if self.has_bias else 0)
            ),
        )

        kernel = functools.partial(
            _linear_allreduce_kernel,
            has_bias=self.has_bias,
            use_scratch=use_scratch,
        )

        out2d = pl.pallas_call(
            kernel,
            out_shape=jax.ShapeDtypeStruct((Mp, Np), out_dtype),
            grid_spec=pltpu.PrefetchScalarGridSpec(
                num_scalar_prefetch=0,
                grid=(gi, gj, gk),
                in_specs=in_specs,
                out_specs=pl.BlockSpec((tm, tn), lambda i, j, k: (i, j)),
                scratch_shapes=scratch_shapes,
            ),
            compiler_params=pltpu.CompilerParams(
                dimension_semantics=("parallel", "parallel", "arbitrary"),
                vmem_limit_bytes=vmem_limit,
            ),
            cost_estimate=cost,
        )(*inputs)

        # TODO(synk): mp_group all_reduce would go here (shard_map + lax.psum,
        # or an in-kernel make_async_remote_copy ring fused into the epilogue).

        if Mp != M or Np != self.N:
            out2d = out2d[:M, : self.N]
        return out2d.reshape(*lead, self.N)


def linear_allreduce(x, weight, bias=None):
    """Functional convenience wrapper (prepares weight on every call)."""
    return LinearAllreduce(weight, bias)(x)


# ---------------------------------------------------------------------------
# Self-test
# ---------------------------------------------------------------------------
if __name__ == "__main__":
    key = jax.random.PRNGKey(0)
    kx, kw, kb = jax.random.split(key, 3)

    # Case 1: f32 with bias -> direct-to-output accumulation path (no scratch).
    B, S, K, N = 2, 8, 32, 32
    x = jax.random.normal(kx, (B, S, K), dtype=jnp.float32)
    weight = jax.random.normal(kw, (N, K), dtype=jnp.float32) * 0.1  # [out, in]
    bias = jax.random.normal(kb, (N,), dtype=jnp.float32) * 0.1

    layer = LinearAllreduce(weight, bias)
    out = jax.block_until_ready(layer(x))
    ref = jnp.einsum("bsk,nk->bsn", x, weight) + bias
    assert out.shape == (B, S, N)
    assert jnp.allclose(out, ref, atol=1e-4, rtol=1e-4)

    # Case 2: bf16, no bias, non-(8,128)-aligned shapes -> scratch accumulator
    # path + lane-dense (128-rounded) output tile + no-bias specs.
    M2, K2, N2 = 20, 48, 40
    x2 = jax.random.normal(kx, (M2, K2), dtype=jnp.bfloat16)
    w2 = (jax.random.normal(kw, (N2, K2), dtype=jnp.float32) * 0.1).astype(
        jnp.bfloat16
    )
    out2 = jax.block_until_ready(linear_allreduce(x2, w2, None))
    ref2 = jnp.dot(x2.astype(jnp.float32), w2.astype(jnp.float32).T)
    assert out2.shape == (M2, N2)
    assert jnp.allclose(out2.astype(jnp.float32), ref2, atol=2e-2, rtol=2e-2)

    print("KERNEL_OK")
</pallas_src>

<mosaic_0001>
module attributes {stable_mosaic.version = 11 : i64} {
  func.func @_linear_allreduce_kernel(%arg0: i32, %arg1: i32, %arg2: i32, %arg3: memref<16x32xf32, #tpu.memory_space<vmem>>, %arg4: memref<32x128xf32, #tpu.memory_space<vmem>>, %arg5: memref<1x128xf32, #tpu.memory_space<vmem>>, %arg6: memref<16x128xf32, #tpu.memory_space<vmem>>) attributes {dimension_semantics = [#tpu.dimension_semantics<parallel>, #tpu.dimension_semantics<parallel>, #tpu.dimension_semantics<arbitrary>], iteration_bounds = array<i64: 1, 1, 1>, scalar_prefetch = 0 : i64, scratch_operands = 0 : i64, tpu.core_type = #tpu.core_type<tc>, window_params = [{transform_indices = @transform_0, window_bounds = array<i64: 16, 32>}, {transform_indices = @transform_1, window_bounds = array<i64: 32, 128>}, {transform_indices = @transform_2, window_bounds = array<i64: 1, 128>}, {transform_indices = @transform_3, window_bounds = array<i64: 16, 128>}]} {
    %c0_i32 = arith.constant 0 : i32
    %0 = arith.cmpi eq, %arg2, %c0_i32 : i32
    %1 = arith.extui %0 : i1 to i32
    %c0_i32_0 = arith.constant 0 : i32
    %2 = arith.cmpi ne, %1, %c0_i32_0 : i32
    scf.if %2 {
      %cst_10 = arith.constant 0.000000e+00 : f32
      %12 = vector.broadcast %cst_10 : f32 to vector<16x128xf32>
      %c0_11 = arith.constant 0 : index
      %c0_12 = arith.constant 0 : index
      %13 = vector.load %arg6[%c0_11, %c0_12] : memref<16x128xf32, #tpu.memory_space<vmem>>, vector<16x128xf32>
      tpu.vector_store %arg6[%c0_11, %c0_12], %12 {strides = array<i32>} : memref<16x128xf32, #tpu.memory_space<vmem>>, vector<16x128xf32>,
    } else {
    }
    %c0 = arith.constant 0 : index
    %c0_1 = arith.constant 0 : index
    %3 = vector.load %arg6[%c0, %c0_1] : memref<16x128xf32, #tpu.memory_space<vmem>>, vector<16x128xf32>
    %c0_2 = arith.constant 0 : index
    %c0_3 = arith.constant 0 : index
    %4 = vector.load %arg3[%c0_2, %c0_3] : memref<16x32xf32, #tpu.memory_space<vmem>>, vector<16x32xf32>
    %c0_4 = arith.constant 0 : index
    %c0_5 = arith.constant 0 : index
    %5 = vector.load %arg4[%c0_4, %c0_5] : memref<32x128xf32, #tpu.memory_space<vmem>>, vector<32x128xf32>
    %cst = arith.constant dense<0.000000e+00> : vector<16x128xf32>
    %6 = tpu.matmul %4, %5, %cst {dimension_numbers = #tpu.dot_dimension_numbers<[1], [0], [0], [1], [0, 0, 1, 1], [], []>} : vector<16x32xf32>, vector<32x128xf32>, vector<16x128xf32> -> vector<16x128xf32>
    %7 = arith.addf %3, %6 : vector<16x128xf32>
    %c0_6 = arith.constant 0 : index
    %c0_7 = arith.constant 0 : index
    %8 = vector.load %arg6[%c0_6, %c0_7] : memref<16x128xf32, #tpu.memory_space<vmem>>, vector<16x128xf32>
    tpu.vector_store %arg6[%c0_6, %c0_7], %7 {strides = array<i32>} : memref<16x128xf32, #tpu.memory_space<vmem>>, vector<16x128xf32>,
    %c0_i32_8 = arith.constant 0 : i32
    %9 = arith.cmpi eq, %arg2, %c0_i32_8 : i32
    %10 = arith.extui %9 : i1 to i32
    %c0_i32_9 = arith.constant 0 : i32
    %11 = arith.cmpi ne, %10, %c0_i32_9 : i32
    scf.if %11 {
      %c0_10 = arith.constant 0 : index
      %c0_11 = arith.constant 0 : index
      %12 = vector.load %arg6[%c0_10, %c0_11] : memref<16x128xf32, #tpu.memory_space<vmem>>, vector<16x128xf32>
      %c0_12 = arith.constant 0 : index
      %c0_13 = arith.constant 0 : index
      %13 = vector.load %arg5[%c0_12, %c0_13] : memref<1x128xf32, #tpu.memory_space<vmem>>, vector<1x128xf32>
      %14 = vector.broadcast %13 : vector<1x128xf32> to vector<16x128xf32>
      %15 = arith.addf %12, %14 : vector<16x128xf32>
      %c0_14 = arith.constant 0 : index
      %c0_15 = arith.constant 0 : index
      %16 = vector.load %arg6[%c0_14, %c0_15] : memref<16x128xf32, #tpu.memory_space<vmem>>, vector<16x128xf32>
      tpu.vector_store %arg6[%c0_14, %c0_15], %15 {strides = array<i32>} : memref<16x128xf32, #tpu.memory_space<vmem>>, vector<16x128xf32>,
    } else {
    }
    return
  }
  func.func @transform_0(%arg0: i32, %arg1: i32, %arg2: i32) -> (i32, i32) {
    %c0_i32 = arith.constant 0 : i32
    return %arg0, %arg2 : i32, i32
  }
  func.func @transform_1(%arg0: i32, %arg1: i32, %arg2: i32) -> (i32, i32) {
    %c0_i32 = arith.constant 0 : i32
    return %arg2, %arg1 : i32, i32
  }
  func.func @transform_2(%arg0: i32, %arg1: i32, %arg2: i32) -> (i32, i32) {
    %c0_i32 = arith.constant 0 : i32
    %c0_i32_0 = arith.constant 0 : i32
    return %c0_i32, %arg1 : i32, i32
  }
  func.func @transform_3(%arg0: i32, %arg1: i32, %arg2: i32) -> (i32, i32) {
    %c0_i32 = arith.constant 0 : i32
    return %arg0, %arg1 : i32, i32
  }
}

</mosaic_0001>

<bundles_post_ra>
// kernel: tpu_custom_call.1
= control target key start
LH: loop header
LB: loop body
LE: loop exit
PB: predicated region body
PF: predicated region fallthrough
CT: control target
= control target key end

     0   :  { %8 = vsyncpa [#allocation3], 0  ;;  %s356_s0 = inlined_call_operand.hbm [shape: f32[16,32], index: 0, kind: input, shape index: {}]   ;;  %s357_s1 = inlined_call_operand.hbm [shape: f32[32,128], index: 1, kind: input, shape index: {}]   ;;  %s358_s2 = inlined_call_operand.vmem [shape: f32[1,128], index: 2, kind: input, shape index: {}]   ;;  %s359_s3 = inlined_call_operand.hbm [shape: f32[16,128], index: 3, kind: output, shape index: {}]  }
   0x1   :  { %9 = vsyncpa [#allocation6], 0 }
   0x2   :  { %10 = vsyncpa [#allocation4], 0  ;;  %s283_s12 = smov [#allocation2]   ;;  %s211_s16 = scalar_lea.hbm %s356_s0, 256 }
   0x3   :  { %s16_s13 = sshll.u32 %s283_s12, 4  ;;  %p212_p0 = scmp.ne.s32.totalorder %s356_s0, %s211_s16  ;;  %s17_s13 = int_to_ptr.vmem [resolvable:$true] %s16_s13 }
   0x4   :  { %p215_p1 = scmp.lt.u32.totalorder %s211_s16, %s356_s0 }
   0x6   :  { %p217_p2 = pnand %p215_p1, %p212_p0 }
   0x8   :  { %220 = shalt.err (!%p217_p2)
}
   0x9   :  { %s221_s21 = scalar_lea.vmem %s17_s13, 256  ;;  %p226_p4 = scmp.lt.s32.totalorder %s17_s13, %s17_s13 }
   0xa   :  { %p222_p3 = scmp.ne.s32.totalorder %s17_s13, %s221_s21  ;;  %p227_p5 = scmp.lt.s32.totalorder %s221_s21, %s221_s21 }
   0xc   :  { %p228_p6 = por %p227_p5, %p226_p4 }
   0xe   :  { %p229_p7 = pnand %p228_p6, %p222_p3 }
  0x10   :  { %232 = shalt.err (!%p229_p7)
}
  0x11   :  { %s284_s22 = smov 128   ;;  %s285_s23 = smov 8  }
  0x12   :  { %22 = dma.hbm_to_vmem [thread:$0]  %s356_s0, 256, %s17_s13, [#allocation3], %s284_s22, %s284_s22, %s285_s23  }
  0x13   :  { %s286_s26 = smov [#allocation5]   ;;  %s233_s30 = scalar_lea.hbm %s357_s1, 512 }
  0x14   :  { %s28_s27 = sshll.u32 %s286_s26, 4  ;;  %p234_p8 = scmp.ne.s32.totalorder %s357_s1, %s233_s30  ;;  %s29_s27 = int_to_ptr.vmem [resolvable:$true] %s28_s27 }
  0x15   :  { %p237_p9 = scmp.lt.u32.totalorder %s233_s30, %s357_s1 }
  0x17   :  { %p239_p10 = pnand %p237_p9, %p234_p8 }
  0x19   :  { %242 = shalt.err (!%p239_p10)
}
  0x1a   :  { %s243_s8 = scalar_lea.vmem %s29_s27, 512  ;;  %p248_p12 = scmp.lt.s32.totalorder %s29_s27, %s29_s27 }
  0x1b   :  { %p244_p11 = scmp.ne.s32.totalorder %s29_s27, %s243_s8  ;;  %p249_p13 = scmp.lt.s32.totalorder %s243_s8, %s243_s8 }
  0x1d   :  { %p250_p0 = por %p249_p13, %p248_p12 }
  0x1f   :  { %p251_p1 = pnand %p250_p0, %p244_p11 }
  0x21   :  { %254 = shalt.err (!%p251_p1)
}
  0x22   :  { %34 = dma.hbm_to_vmem [thread:$0]  %s357_s1, 512, %s29_s27, [#allocation6], %s284_s22, %s284_s22, %s285_s23  }
  0x23   :  { %277 = dma.done.wait [#allocation3], 256  }
  0x24   :  { %278 = vsyncadd [#allocation3], 4294967040 }
  0x25   :  { %279 = dma.done.wait [#allocation6], 512  }
  0x26   :  { %280 = vsyncadd [#allocation6], 4294966784  ;;  %vm57_vm0 = vcmask 261120   ;;  %v53_v0 = vld [vmem:[#allocation5] sm:$0xff]  ;;  %v54_v1 = vld [vmem:[#allocation5 + $0x8] sm:$0xff]  ;;  %s287_s11 = smov [#allocation7]  }
  0x27   :  { %v55_v2 = vld [vmem:[#allocation5 + $0x10] sm:$0xff]  ;;  %v197_v3 = vpack.c.bf16 %v54_v1, %v53_v0  ;;  %v56_v4 = vld [vmem:[#allocation5 + $0x18] sm:$0xff]  ;;  %s164_s12 = sshll.u32 %s287_s11, 4  ;;  %s165_s12 = int_to_ptr.vmem [resolvable:$true] %s164_s12 }
  0x28   :  { %v51_v5 = vld [vmem:[#allocation2] sm:$0xff]  ;;  %v201_v6 = vpack.c.bf16 %v56_v4, %v55_v2  ;;  %v52_v7 = vld [vmem:[#allocation2 + $0x8] sm:$0xff]  ;;  %s255_s13 = scalar_lea.vmem %s165_s12, 256  ;;  %p260_p3 = scmp.lt.s32.totalorder %s165_s12, %s165_s12 }
  0x29   :  { %194 = vmatprep.mubr.msk.f32.mxu0 %vm57_vm0, %v51_v5  ;;  %198 = vmatprep.subr.bf16.mxu0 %v197_v3  ;;  %v179_v9 = vld [vmem:[%s358_s2] ss:$0 sm:$0xff]  ;;  %p256_p2 = scmp.ne.s32.totalorder %s165_s12, %s255_s13  ;;  %p261_p4 = scmp.lt.s32.totalorder %s255_s13, %s255_s13 }
  0x2a   :  { %200 = vmatpush3.bf16.msra.mxu0 %v197_v3 }
  0x2b   :  { %202 = vmatprep.subr.bf16.mxu0 %v201_v6  ;;  %p262_p5 = por %p261_p4, %p260_p3 }
  0x2d   :  { %p263_p6 = pnand %p262_p5, %p256_p2 }
  0x2e   :  { %204 = vmatpush3.bf16.msra.mxu0 %v201_v6 }
  0x31   :  { %195 = vmatmul.mubr.msk.f32.vlgmr.msra.gmra.mrb[0].mxu0 %vm57_vm0, %v52_v7 }
 0x104   :  { %v196_v8 = vpop.f32.mrb[0].mxu0 }
 0x105   :  { %v130_v10 = vpop.f32.mrb[1].mxu0  ;;  %v156_v11 = vadd.f32 %v196_v8, %v179_v9 }
 0x106   :  { %v155_v12 = vadd.f32 %v179_v9, %v130_v10 }
 0x107   :  { %158 = vst [vmem:[#allocation7 + $0x8] sm:$0xff] %v156_v11 }
 0x108   :  { %157 = vst [vmem:[#allocation7] sm:$0xff] %v155_v12 }
 0x109   :  { %266 = shalt.err (!%p263_p6)
}
 0x10a   :  { %s267_s16 = scalar_lea.hbm %s359_s3, 256 }
 0x10b   :  { %p268_p7 = scmp.ne.s32.totalorder %s359_s3, %s267_s16  ;;  %p271_p8 = scmp.lt.u32.totalorder %s267_s16, %s359_s3 }
 0x10d   :  { %p273_p9 = pnand %p271_p8, %p268_p7 }
 0x10f   :  { %276 = shalt.err (!%p273_p9)
}
 0x110   :  { %170 = dma.vmem_to_hbm [thread:$0]  %s165_s12, 256, %s359_s3, [#allocation4], %s284_s22, %s284_s22, %s285_s23  }
 0x111   :  { %281 = dma.done.wait [#allocation4], 256  }
 0x112   :  { %282 = vsyncadd [#allocation4], 4294967040 }
 0x113   :  { %174 = vsyncpa [#allocation3], 1 }
 0x114   :  { %175 = vsyncpa [#allocation6], 1 }
 0x115   :  { %176 = vsyncpa [#allocation4], 1 }

</bundles_post_ra>
